<compile_context>
chip_gen: v7x
topology: tpu7x:2x2x1
jax: 0.10.0
libtpu: 0.0.40
codegen_flags: <defaults>
</compile_context>

<pallas_src>
import math
import functools

import jax
import jax.numpy as jnp
from jax.experimental import pallas as pl
from jax.experimental.pallas import tpu as pltpu


def _mha_kernel(q_in_ref, k_in_ref, v_in_ref,
                wq_ref, bq_ref, wk_ref, bk_ref, wv_ref, bv_ref,
                wo_ref, bo_ref, gamma_ref, beta_ref,
                out_ref, *,
                h, d_k, d_v, eps, compute_dtype, approx_recip):
    """Grid = (batch_tiles,). One batch tile does projections + all heads + LN."""
    bt, nq, d_model = q_in_ref.shape
    nk = k_in_ref.shape[1]
    cd = compute_dtype

    # Flatten (batch_tile, seq) into the MXU M dimension; cast ONCE (hoisted out
    # of the head loop — important on v5e where the VPU has no native bf16 path).
    x_q = q_in_ref[...].reshape(bt * nq, d_model)          # residual dtype (f32)
    x_qc = x_q.astype(cd)
    x_k = k_in_ref[...].reshape(bt * nk, d_model)          # already compute dtype
    x_v = v_in_ref[...].reshape(bt * nk, d_model)

    # Fused lane-dense projections across ALL heads (one MXU matmul each).
    q_all = jnp.dot(x_qc, wq_ref[...], preferred_element_type=jnp.float32) + bq_ref[...]
    k_all = jnp.dot(x_k, wk_ref[...], preferred_element_type=jnp.float32) + bk_ref[...]
    v_all = jnp.dot(x_v, wv_ref[...], preferred_element_type=jnp.float32) + bv_ref[...]
    # q_all: (bt*nq, h*d_k)  k_all: (bt*nk, h*d_k)  v_all: (bt*nk, h*d_v)   all f32

    scale = 1.0 / math.sqrt(d_k)
    acc = jnp.zeros((bt * nq, d_model), jnp.float32)

    # Static, unrolled loop over heads (h is small and known at trace time).
    for head in range(h):
        qh = q_all[:, head * d_k:(head + 1) * d_k].reshape(bt, nq, d_k).astype(cd)
        kh = k_all[:, head * d_k:(head + 1) * d_k].reshape(bt, nk, d_k).astype(cd)
        vh = v_all[:, head * d_v:(head + 1) * d_v].reshape(bt, nk, d_v).astype(cd)

        # Batched scores over the batch tile; contraction on the last dims (no k.T).
        att = jnp.einsum('bqd,bkd->bqk', qh, kh,
                         preferred_element_type=jnp.float32) * scale
        # TODO(synk): attention_mask / attention_weights not plumbed (None in this config).
        att = att - jnp.max(att, axis=-1, keepdims=True)
        att = jnp.exp(att)
        att = att * pl.reciprocal(jnp.sum(att, axis=-1, keepdims=True),
                                  approx=approx_recip)
        # TODO(synk): for long nk, tile nk flash-style (online softmax) to cap the
        # (bt, nq, nk) score block in VMEM (required on v7x's 64 MiB per-TC VMEM),
        # with Buffered(3) K/V specs and pl.multiple_of hints on the chunk starts.

        o_h = jnp.einsum('bqk,bkd->bqd', att.astype(cd), vh,
                         preferred_element_type=jnp.float32)     # (bt, nq, d_v)
        # Sum over heads of o_h @ Wo_slab[head] == concat(heads) @ Wo.
        acc = acc + jnp.dot(o_h.reshape(bt * nq, d_v).astype(cd), wo_ref[head],
                            preferred_element_type=jnp.float32)

    # TODO(synk): dropout is an inference-time identity (eval mode); not applied.
    y = x_q.astype(jnp.float32) + acc + bo_ref[...]
    mean = jnp.mean(y, axis=-1, keepdims=True)
    yc = y - mean
    var = jnp.mean(yc * yc, axis=-1, keepdims=True)
    inv = jax.lax.rsqrt(var + eps)
    normed = yc * inv * gamma_ref[...] + beta_ref[...]
    # TODO(synk): d_model=32 makes the output lane-sparse; at production keep
    # d_model a multiple of 128 (or pad in the wrapper) for unmasked vst stores.
    out_ref[...] = normed.reshape(bt, nq, d_model).astype(out_ref.dtype)


def _pick_batch_tile(b_s, nq, target_rows=512, min_rows_for_split=128):
    """Largest divisor of b_s so (tile*nq) rows ~ target_rows; prefer >=2 grid
    steps (v7x has 2 TensorCores) when each step still keeps a deep M dim."""
    want = max(1, target_rows // max(nq, 1))
    divisors = [d for d in range(1, b_s + 1) if b_s % d == 0]
    cands = [d for d in divisors if d <= want] or [1]
    best = max(cands)
    split = [d for d in cands if b_s // d >= 2 and d * nq >= min_rows_for_split]
    if split:
        best = max(split)
    return best
    # TODO(synk): prime/awkward b_s degrades to batch_tile=1; add a padded-tail path.


def prepare_params(params, *, h, d_k, d_v, compute_dtype=jnp.bfloat16):
    """Repack/cast weights ONCE (at parameter-load time), outside the forward path."""
    wq, bq, wk, bk, wv, bv, wo, bo, gamma, beta = params
    d_model = wq.shape[0]
    wq_c = wq.astype(compute_dtype)                        # (d_model, h*d_k)
    wk_c = wk.astype(compute_dtype)                        # (d_model, h*d_k)
    wv_c = wv.astype(compute_dtype)                        # (d_model, h*d_v)
    wo_s = wo.reshape(h, d_v, d_model).astype(compute_dtype)
    bq32 = bq.reshape(1, h * d_k).astype(jnp.float32)
    bk32 = bk.reshape(1, h * d_k).astype(jnp.float32)
    bv32 = bv.reshape(1, h * d_v).astype(jnp.float32)
    bo32 = bo.reshape(1, d_model).astype(jnp.float32)
    gamma32 = gamma.reshape(1, d_model).astype(jnp.float32)
    beta32 = beta.reshape(1, d_model).astype(jnp.float32)
    return (wq_c, bq32, wk_c, bk32, wv_c, bv32, wo_s, bo32, gamma32, beta32)


def multi_head_attention(queries, keys, values, prepared, *, h, d_k, d_v,
                         eps=1e-5, compute_dtype=jnp.bfloat16,
                         approx_softmax_recip=True, batch_tile=None):
    b_s, nq, d_model = queries.shape
    nk = keys.shape[1]
    wq_c, bq32, wk_c, bk32, wv_c, bv32, wo_s, bo32, gamma32, beta32 = prepared

    # K/V only feed MXU operands -> ship at compute dtype (halves DMA when bf16).
    # Queries stay in their original dtype for the f32 residual + LayerNorm.
    keys_c = keys.astype(compute_dtype)
    values_c = values.astype(compute_dtype)

    if batch_tile is None:
        batch_tile = _pick_batch_tile(b_s, nq)
    assert b_s % batch_tile == 0

    kernel = functools.partial(
        _mha_kernel, h=h, d_k=d_k, d_v=d_v, eps=eps,
        compute_dtype=compute_dtype, approx_recip=approx_softmax_recip)

    def const_spec(shape):
        return pl.BlockSpec(shape, lambda b: (0,) * len(shape))

    grid = (b_s // batch_tile,)

    return pl.pallas_call(
        kernel,
        out_shape=jax.ShapeDtypeStruct((b_s, nq, d_model), queries.dtype),
        grid_spec=pltpu.PrefetchScalarGridSpec(
            num_scalar_prefetch=0,
            grid=grid,
            in_specs=[
                pl.BlockSpec((batch_tile, nq, d_model), lambda b: (b, 0, 0)),
                pl.BlockSpec((batch_tile, nk, d_model), lambda b: (b, 0, 0)),
                pl.BlockSpec((batch_tile, nk, d_model), lambda b: (b, 0, 0)),
                const_spec(wq_c.shape), const_spec(bq32.shape),
                const_spec(wk_c.shape), const_spec(bk32.shape),
                const_spec(wv_c.shape), const_spec(bv32.shape),
                const_spec(wo_s.shape), const_spec(bo32.shape),
                const_spec(gamma32.shape), const_spec(beta32.shape),
            ],
            out_specs=pl.BlockSpec((batch_tile, nq, d_model), lambda b: (b, 0, 0)),
        ),
        compiler_params=pltpu.CompilerParams(
            dimension_semantics=("parallel",)),
    )(queries, keys_c, values_c,
      wq_c, bq32, wk_c, bk32, wv_c, bv32, wo_s, bo32, gamma32, beta32)


def _xavier_uniform(key, fan_out, fan_in, dtype=jnp.float32):
    # Matches torch.nn.init.xavier_uniform_ on an (out, in) weight; returns the
    # transposed (in, out) matrix for x @ W use in the kernel.
    bound = math.sqrt(6.0 / (fan_in + fan_out))
    w = jax.random.uniform(key, (fan_out, fan_in), dtype, minval=-bound, maxval=bound)
    return w.T


def init_params(key, d_model, d_k, d_v, h, dtype=jnp.float32):
    k1, k2, k3, k4 = jax.random.split(key, 4)
    wq = _xavier_uniform(k1, h * d_k, d_model, dtype)      # (d_model, h*d_k)
    wk = _xavier_uniform(k2, h * d_k, d_model, dtype)
    wv = _xavier_uniform(k3, h * d_v, d_model, dtype)
    wo = _xavier_uniform(k4, d_model, h * d_v, dtype)      # (h*d_v, d_model)
    bq = jnp.zeros((1, h * d_k), dtype)
    bk = jnp.zeros((1, h * d_k), dtype)
    bv = jnp.zeros((1, h * d_v), dtype)
    bo = jnp.zeros((1, d_model), dtype)
    gamma = jnp.ones((1, d_model), dtype)                  # LayerNorm weight
    beta = jnp.zeros((1, d_model), dtype)                  # LayerNorm bias
    return (wq, bq, wk, bk, wv, bv, wo, bo, gamma, beta)


def _reference(queries, keys, values, params, *, h, d_k, d_v, eps=1e-5):
    wq, bq, wk, bk, wv, bv, wo, bo, gamma, beta = params
    b_s, nq, d_model = queries.shape
    nk = keys.shape[1]
    q = (queries @ wq + bq).reshape(b_s, nq, h, d_k).transpose(0, 2, 1, 3)
    k = (keys @ wk + bk).reshape(b_s, nk, h, d_k).transpose(0, 2, 3, 1)
    v = (values @ wv + bv).reshape(b_s, nk, h, d_v).transpose(0, 2, 1, 3)
    att = jnp.einsum('bhqd,bhdk->bhqk', q, k) / math.sqrt(d_k)
    att = jax.nn.softmax(att, axis=-1)
    out = jnp.einsum('bhqk,bhkd->bhqd', att, v).transpose(0, 2, 1, 3).reshape(b_s, nq, h * d_v)
    out = out @ wo + bo
    y = queries + out
    mean = jnp.mean(y, axis=-1, keepdims=True)
    var = jnp.mean((y - mean) ** 2, axis=-1, keepdims=True)
    return (y - mean) * jax.lax.rsqrt(var + eps) * gamma + beta


if __name__ == "__main__":
    d_model, d_k, d_v, h = 32, 8, 8, 4
    b_s, nq, nk = 2, 8, 8

    key = jax.random.PRNGKey(0)
    kq, kk, kv, kp = jax.random.split(key, 4)
    queries = jax.random.normal(kq, (b_s, nq, d_model), jnp.float32)
    keys = jax.random.normal(kk, (b_s, nk, d_model), jnp.float32)
    values = jax.random.normal(kv, (b_s, nk, d_model), jnp.float32)

    params = init_params(kp, d_model, d_k, d_v, h)
    ref = _reference(queries, keys, values, params, h=h, d_k=d_k, d_v=d_v)

    # Exact-math config (f32 MXU operands, exact reciprocal) — tight check.
    prepared_f32 = prepare_params(params, h=h, d_k=d_k, d_v=d_v,
                                  compute_dtype=jnp.float32)
    out_f32 = multi_head_attention(queries, keys, values, prepared_f32,
                                   h=h, d_k=d_k, d_v=d_v,
                                   compute_dtype=jnp.float32,
                                   approx_softmax_recip=False)
    out_f32 = jax.block_until_ready(out_f32)
    assert out_f32.shape == (b_s, nq, d_model)
    assert jnp.allclose(out_f32, ref, atol=1e-4, rtol=1e-4), "f32 mismatch vs reference"

    # Performance config (bf16 MXU operands + EUP approx reciprocal) — loose check.
    prepared_bf16 = prepare_params(params, h=h, d_k=d_k, d_v=d_v,
                                   compute_dtype=jnp.bfloat16)
    out_bf16 = multi_head_attention(queries, keys, values, prepared_bf16,
                                    h=h, d_k=d_k, d_v=d_v,
                                    compute_dtype=jnp.bfloat16,
                                    approx_softmax_recip=True)
    out_bf16 = jax.block_until_ready(out_bf16)
    assert out_bf16.shape == (b_s, nq, d_model)
    assert jnp.allclose(out_bf16, ref, atol=7e-2, rtol=7e-2), "bf16 mismatch vs reference"

    print("KERNEL_OK")
</pallas_src>

<mosaic_0001>
module attributes {stable_mosaic.version = 11 : i64} {
  func.func @_mha_kernel(%arg0: i32, %arg1: memref<2x8x32xf32, #tpu.memory_space<vmem>>, %arg2: memref<2x8x32xf32, #tpu.memory_space<vmem>>, %arg3: memref<2x8x32xf32, #tpu.memory_space<vmem>>, %arg4: memref<32x32xf32, #tpu.memory_space<vmem>>, %arg5: memref<1x32xf32, #tpu.memory_space<vmem>>, %arg6: memref<32x32xf32, #tpu.memory_space<vmem>>, %arg7: memref<1x32xf32, #tpu.memory_space<vmem>>, %arg8: memref<32x32xf32, #tpu.memory_space<vmem>>, %arg9: memref<1x32xf32, #tpu.memory_space<vmem>>, %arg10: memref<4x8x32xf32, #tpu.memory_space<vmem>>, %arg11: memref<1x32xf32, #tpu.memory_space<vmem>>, %arg12: memref<1x32xf32, #tpu.memory_space<vmem>>, %arg13: memref<1x32xf32, #tpu.memory_space<vmem>>, %arg14: memref<2x8x32xf32, #tpu.memory_space<vmem>>) attributes {dimension_semantics = [#tpu.dimension_semantics<parallel>], iteration_bounds = array<i64: 1>, scalar_prefetch = 0 : i64, scratch_operands = 0 : i64, tpu.core_type = #tpu.core_type<tc>, window_params = [{transform_indices = @transform_0, window_bounds = array<i64: 2, 8, 32>}, {transform_indices = @transform_1, window_bounds = array<i64: 2, 8, 32>}, {transform_indices = @transform_2, window_bounds = array<i64: 2, 8, 32>}, {pipeline_mode = #tpu.pipeline_mode<synchronous>, transform_indices = @transform_3, window_bounds = array<i64: 32, 32>}, {pipeline_mode = #tpu.pipeline_mode<synchronous>, transform_indices = @transform_4, window_bounds = array<i64: 1, 32>}, {pipeline_mode = #tpu.pipeline_mode<synchronous>, transform_indices = @transform_5, window_bounds = array<i64: 32, 32>}, {pipeline_mode = #tpu.pipeline_mode<synchronous>, transform_indices = @transform_6, window_bounds = array<i64: 1, 32>}, {pipeline_mode = #tpu.pipeline_mode<synchronous>, transform_indices = @transform_7, window_bounds = array<i64: 32, 32>}, {pipeline_mode = #tpu.pipeline_mode<synchronous>, transform_indices = @transform_8, window_bounds = array<i64: 1, 32>}, {pipeline_mode = #tpu.pipeline_mode<synchronous>, transform_indices = @transform_9, window_bounds = array<i64: 4, 8, 32>}, {pipeline_mode = #tpu.pipeline_mode<synchronous>, transform_indices = @transform_10, window_bounds = array<i64: 1, 32>}, {pipeline_mode = #tpu.pipeline_mode<synchronous>, transform_indices = @transform_11, window_bounds = array<i64: 1, 32>}, {pipeline_mode = #tpu.pipeline_mode<synchronous>, transform_indices = @transform_12, window_bounds = array<i64: 1, 32>}, {transform_indices = @transform_13, window_bounds = array<i64: 2, 8, 32>}]} {
    %c0 = arith.constant 0 : index
    %c0_0 = arith.constant 0 : index
    %c0_1 = arith.constant 0 : index
    %0 = vector.load %arg1[%c0, %c0_0, %c0_1] : memref<2x8x32xf32, #tpu.memory_space<vmem>>, vector<2x8x32xf32>
    %1 = vector.shape_cast %0 : vector<2x8x32xf32> to vector<16x32xf32>
    %c0_2 = arith.constant 0 : index
    %c0_3 = arith.constant 0 : index
    %c0_4 = arith.constant 0 : index
    %2 = vector.load %arg2[%c0_2, %c0_3, %c0_4] : memref<2x8x32xf32, #tpu.memory_space<vmem>>, vector<2x8x32xf32>
    %3 = vector.shape_cast %2 : vector<2x8x32xf32> to vector<16x32xf32>
    %c0_5 = arith.constant 0 : index
    %c0_6 = arith.constant 0 : index
    %c0_7 = arith.constant 0 : index
    %4 = vector.load %arg3[%c0_5, %c0_6, %c0_7] : memref<2x8x32xf32, #tpu.memory_space<vmem>>, vector<2x8x32xf32>
    %5 = vector.shape_cast %4 : vector<2x8x32xf32> to vector<16x32xf32>
    %c0_8 = arith.constant 0 : index
    %c0_9 = arith.constant 0 : index
    %6 = vector.load %arg4[%c0_8, %c0_9] : memref<32x32xf32, #tpu.memory_space<vmem>>, vector<32x32xf32>
    %cst = arith.constant dense<0.000000e+00> : vector<16x32xf32>
    %7 = tpu.matmul %1, %6, %cst {dimension_numbers = #tpu.dot_dimension_numbers<[1], [0], [0], [1], [0, 0, 1, 1], [], []>} : vector<16x32xf32>, vector<32x32xf32>, vector<16x32xf32> -> vector<16x32xf32>
    %c0_10 = arith.constant 0 : index
    %c0_11 = arith.constant 0 : index
    %8 = vector.load %arg5[%c0_10, %c0_11] : memref<1x32xf32, #tpu.memory_space<vmem>>, vector<1x32xf32>
    %9 = vector.broadcast %8 : vector<1x32xf32> to vector<16x32xf32>
    %10 = arith.addf %7, %9 : vector<16x32xf32>
    %c0_12 = arith.constant 0 : index
    %c0_13 = arith.constant 0 : index
    %11 = vector.load %arg6[%c0_12, %c0_13] : memref<32x32xf32, #tpu.memory_space<vmem>>, vector<32x32xf32>
    %cst_14 = arith.constant dense<0.000000e+00> : vector<16x32xf32>
    %12 = tpu.matmul %3, %11, %cst_14 {dimension_numbers = #tpu.dot_dimension_numbers<[1], [0], [0], [1], [0, 0, 1, 1], [], []>} : vector<16x32xf32>, vector<32x32xf32>, vector<16x32xf32> -> vector<16x32xf32>
    %c0_15 = arith.constant 0 : index
    %c0_16 = arith.constant 0 : index
    %13 = vector.load %arg7[%c0_15, %c0_16] : memref<1x32xf32, #tpu.memory_space<vmem>>, vector<1x32xf32>
    %14 = vector.broadcast %13 : vector<1x32xf32> to vector<16x32xf32>
    %15 = arith.addf %12, %14 : vector<16x32xf32>
    %c0_17 = arith.constant 0 : index
    %c0_18 = arith.constant 0 : index
    %16 = vector.load %arg8[%c0_17, %c0_18] : memref<32x32xf32, #tpu.memory_space<vmem>>, vector<32x32xf32>
    %cst_19 = arith.constant dense<0.000000e+00> : vector<16x32xf32>
    %17 = tpu.matmul %5, %16, %cst_19 {dimension_numbers = #tpu.dot_dimension_numbers<[1], [0], [0], [1], [0, 0, 1, 1], [], []>} : vector<16x32xf32>, vector<32x32xf32>, vector<16x32xf32> -> vector<16x32xf32>
    %c0_20 = arith.constant 0 : index
    %c0_21 = arith.constant 0 : index
    %18 = vector.load %arg9[%c0_20, %c0_21] : memref<1x32xf32, #tpu.memory_space<vmem>>, vector<1x32xf32>
    %19 = vector.broadcast %18 : vector<1x32xf32> to vector<16x32xf32>
    %20 = arith.addf %17, %19 : vector<16x32xf32>
    %cst_22 = arith.constant 0.000000e+00 : f32
    %21 = vector.broadcast %cst_22 : f32 to vector<16x32xf32>
    %22 = vector.extract_strided_slice %10 {offsets = [0, 0], sizes = [16, 8], strides = [1, 1]} : vector<16x32xf32> to vector<16x8xf32>
    %23 = vector.shape_cast %22 : vector<16x8xf32> to vector<2x8x8xf32>
    %24 = vector.extract_strided_slice %15 {offsets = [0, 0], sizes = [16, 8], strides = [1, 1]} : vector<16x32xf32> to vector<16x8xf32>
    %25 = vector.shape_cast %24 : vector<16x8xf32> to vector<2x8x8xf32>
    %26 = vector.extract_strided_slice %20 {offsets = [0, 0], sizes = [16, 8], strides = [1, 1]} : vector<16x32xf32> to vector<16x8xf32>
    %27 = vector.shape_cast %26 : vector<16x8xf32> to vector<2x8x8xf32>
    "tpu.trace_start"() <{level = 10 : i32, message = "bqd,bkd->bqk"}> : () -> ()
    %cst_23 = arith.constant dense<0.000000e+00> : vector<2x8x8xf32>
    %28 = tpu.matmul %23, %25, %cst_23 {dimension_numbers = #tpu.dot_dimension_numbers<[2], [2], [1], [1], [0, 0, 0, 1, 1, 1], [0], [0]>} : vector<2x8x8xf32>, vector<2x8x8xf32>, vector<2x8x8xf32> -> vector<2x8x8xf32>
    "tpu.trace_stop"() : () -> ()
    %cst_24 = arith.constant 0.353553385 : f32
    %29 = vector.broadcast %cst_24 : f32 to vector<2x8x8xf32>
    %30 = arith.mulf %28, %29 : vector<2x8x8xf32>
    %cst_25 = arith.constant dense<0xFF800000> : vector<2x8xf32>
    %31 = vector.multi_reduction <maximumf>, %30, %cst_25 [2] : vector<2x8x8xf32> to vector<2x8xf32>
    %32 = vector.shape_cast %31 : vector<2x8xf32> to vector<2x8x1xf32>
    %33 = vector.broadcast %32 : vector<2x8x1xf32> to vector<2x8x8xf32>
    %34 = arith.subf %30, %33 : vector<2x8x8xf32>
    %35 = math.exp %34 : vector<2x8x8xf32>
    %cst_26 = arith.constant dense<0.000000e+00> : vector<2x8xf32>
    %36 = vector.multi_reduction <add>, %35, %cst_26 [2] : vector<2x8x8xf32> to vector<2x8xf32>
    %37 = vector.shape_cast %36 : vector<2x8xf32> to vector<2x8x1xf32>
    %38 = tpu.reciprocal %37 : vector<2x8x1xf32> -> vector<2x8x1xf32>
    %39 = vector.broadcast %38 : vector<2x8x1xf32> to vector<2x8x8xf32>
    %40 = arith.mulf %35, %39 : vector<2x8x8xf32>
    "tpu.trace_start"() <{level = 10 : i32, message = "bqk,bkd->bqd"}> : () -> ()
    %cst_27 = arith.constant dense<0.000000e+00> : vector<2x8x8xf32>
    %41 = tpu.matmul %40, %27, %cst_27 {dimension_numbers = #tpu.dot_dimension_numbers<[2], [1], [1], [2], [0, 0, 0, 1, 1, 2], [0], [0]>} : vector<2x8x8xf32>, vector<2x8x8xf32>, vector<2x8x8xf32> -> vector<2x8x8xf32>
    "tpu.trace_stop"() : () -> ()
    %42 = vector.shape_cast %41 : vector<2x8x8xf32> to vector<16x8xf32>
    %c0_28 = arith.constant 0 : index
    %c0_29 = arith.constant 0 : index
    %c0_30 = arith.constant 0 : index
    %43 = vector.load %arg10[%c0_28, %c0_29, %c0_30] : memref<4x8x32xf32, #tpu.memory_space<vmem>>, vector<1x8x32xf32>
    %44 = vector.shape_cast %43 : vector<1x8x32xf32> to vector<8x32xf32>
    %cst_31 = arith.constant dense<0.000000e+00> : vector<16x32xf32>
    %45 = tpu.matmul %42, %44, %cst_31 {dimension_numbers = #tpu.dot_dimension_numbers<[1], [0], [0], [1], [0, 0, 1, 1], [], []>} : vector<16x8xf32>, vector<8x32xf32>, vector<16x32xf32> -> vector<16x32xf32>
    %46 = arith.addf %21, %45 : vector<16x32xf32>
    %47 = vector.extract_strided_slice %10 {offsets = [0, 8], sizes = [16, 8], strides = [1, 1]} : vector<16x32xf32> to vector<16x8xf32>
    %48 = vector.shape_cast %47 : vector<16x8xf32> to vector<2x8x8xf32>
    %49 = vector.extract_strided_slice %15 {offsets = [0, 8], sizes = [16, 8], strides = [1, 1]} : vector<16x32xf32> to vector<16x8xf32>
    %50 = vector.shape_cast %49 : vector<16x8xf32> to vector<2x8x8xf32>
    %51 = vector.extract_strided_slice %20 {offsets = [0, 8], sizes = [16, 8], strides = [1, 1]} : vector<16x32xf32> to vector<16x8xf32>
    %52 = vector.shape_cast %51 : vector<16x8xf32> to vector<2x8x8xf32>
    "tpu.trace_start"() <{level = 10 : i32, message = "bqd,bkd->bqk"}> : () -> ()
    %cst_32 = arith.constant dense<0.000000e+00> : vector<2x8x8xf32>
    %53 = tpu.matmul %48, %50, %cst_32 {dimension_numbers = #tpu.dot_dimension_numbers<[2], [2], [1], [1], [0, 0, 0, 1, 1, 1], [0], [0]>} : vector<2x8x8xf32>, vector<2x8x8xf32>, vector<2x8x8xf32> -> vector<2x8x8xf32>
    "tpu.trace_stop"() : () -> ()
    %cst_33 = arith.constant 0.353553385 : f32
    %54 = vector.broadcast %cst_33 : f32 to vector<2x8x8xf32>
    %55 = arith.mulf %53, %54 : vector<2x8x8xf32>
    %cst_34 = arith.constant dense<0xFF800000> : vector<2x8xf32>
    %56 = vector.multi_reduction <maximumf>, %55, %cst_34 [2] : vector<2x8x8xf32> to vector<2x8xf32>
    %57 = vector.shape_cast %56 : vector<2x8xf32> to vector<2x8x1xf32>
    %58 = vector.broadcast %57 : vector<2x8x1xf32> to vector<2x8x8xf32>
    %59 = arith.subf %55, %58 : vector<2x8x8xf32>
    %60 = math.exp %59 : vector<2x8x8xf32>
    %cst_35 = arith.constant dense<0.000000e+00> : vector<2x8xf32>
    %61 = vector.multi_reduction <add>, %60, %cst_35 [2] : vector<2x8x8xf32> to vector<2x8xf32>
    %62 = vector.shape_cast %61 : vector<2x8xf32> to vector<2x8x1xf32>
    %63 = tpu.reciprocal %62 : vector<2x8x1xf32> -> vector<2x8x1xf32>
    %64 = vector.broadcast %63 : vector<2x8x1xf32> to vector<2x8x8xf32>
    %65 = arith.mulf %60, %64 : vector<2x8x8xf32>
    "tpu.trace_start"() <{level = 10 : i32, message = "bqk,bkd->bqd"}> : () -> ()
    %cst_36 = arith.constant dense<0.000000e+00> : vector<2x8x8xf32>
    %66 = tpu.matmul %65, %52, %cst_36 {dimension_numbers = #tpu.dot_dimension_numbers<[2], [1], [1], [2], [0, 0, 0, 1, 1, 2], [0], [0]>} : vector<2x8x8xf32>, vector<2x8x8xf32>, vector<2x8x8xf32> -> vector<2x8x8xf32>
    "tpu.trace_stop"() : () -> ()
    %67 = vector.shape_cast %66 : vector<2x8x8xf32> to vector<16x8xf32>
    %c1 = arith.constant 1 : index
    %c0_37 = arith.constant 0 : index
    %c0_38 = arith.constant 0 : index
    %68 = vector.load %arg10[%c1, %c0_37, %c0_38] : memref<4x8x32xf32, #tpu.memory_space<vmem>>, vector<1x8x32xf32>
    %69 = vector.shape_cast %68 : vector<1x8x32xf32> to vector<8x32xf32>
    %cst_39 = arith.constant dense<0.000000e+00> : vector<16x32xf32>
    %70 = tpu.matmul %67, %69, %cst_39 {dimension_numbers = #tpu.dot_dimension_numbers<[1], [0], [0], [1], [0, 0, 1, 1], [], []>} : vector<16x8xf32>, vector<8x32xf32>, vector<16x32xf32> -> vector<16x32xf32>
    %71 = arith.addf %46, %70 : vector<16x32xf32>
    %72 = vector.extract_strided_slice %10 {offsets = [0, 16], sizes = [16, 8], strides = [1, 1]} : vector<16x32xf32> to vector<16x8xf32>
    %73 = vector.shape_cast %72 : vector<16x8xf32> to vector<2x8x8xf32>
    %74 = vector.extract_strided_slice %15 {offsets = [0, 16], sizes = [16, 8], strides = [1, 1]} : vector<16x32xf32> to vector<16x8xf32>
    %75 = vector.shape_cast %74 : vector<16x8xf32> to vector<2x8x8xf32>
    %76 = vector.extract_strided_slice %20 {offsets = [0, 16], sizes = [16, 8], strides = [1, 1]} : vector<16x32xf32> to vector<16x8xf32>
    %77 = vector.shape_cast %76 : vector<16x8xf32> to vector<2x8x8xf32>
    "tpu.trace_start"() <{level = 10 : i32, message = "bqd,bkd->bqk"}> : () -> ()
    %cst_40 = arith.constant dense<0.000000e+00> : vector<2x8x8xf32>
    %78 = tpu.matmul %73, %75, %cst_40 {dimension_numbers = #tpu.dot_dimension_numbers<[2], [2], [1], [1], [0, 0, 0, 1, 1, 1], [0], [0]>} : vector<2x8x8xf32>, vector<2x8x8xf32>, vector<2x8x8xf32> -> vector<2x8x8xf32>
    "tpu.trace_stop"() : () -> ()
    %cst_41 = arith.constant 0.353553385 : f32
    %79 = vector.broadcast %cst_41 : f32 to vector<2x8x8xf32>
    %80 = arith.mulf %78, %79 : vector<2x8x8xf32>
    %cst_42 = arith.constant dense<0xFF800000> : vector<2x8xf32>
    %81 = vector.multi_reduction <maximumf>, %80, %cst_42 [2] : vector<2x8x8xf32> to vector<2x8xf32>
    %82 = vector.shape_cast %81 : vector<2x8xf32> to vector<2x8x1xf32>
    %83 = vector.broadcast %82 : vector<2x8x1xf32> to vector<2x8x8xf32>
    %84 = arith.subf %80, %83 : vector<2x8x8xf32>
    %85 = math.exp %84 : vector<2x8x8xf32>
    %cst_43 = arith.constant dense<0.000000e+00> : vector<2x8xf32>
    %86 = vector.multi_reduction <add>, %85, %cst_43 [2] : vector<2x8x8xf32> to vector<2x8xf32>
    %87 = vector.shape_cast %86 : vector<2x8xf32> to vector<2x8x1xf32>
    %88 = tpu.reciprocal %87 : vector<2x8x1xf32> -> vector<2x8x1xf32>
    %89 = vector.broadcast %88 : vector<2x8x1xf32> to vector<2x8x8xf32>
    %90 = arith.mulf %85, %89 : vector<2x8x8xf32>
    "tpu.trace_start"() <{level = 10 : i32, message = "bqk,bkd->bqd"}> : () -> ()
    %cst_44 = arith.constant dense<0.000000e+00> : vector<2x8x8xf32>
    %91 = tpu.matmul %90, %77, %cst_44 {dimension_numbers = #tpu.dot_dimension_numbers<[2], [1], [1], [2], [0, 0, 0, 1, 1, 2], [0], [0]>} : vector<2x8x8xf32>, vector<2x8x8xf32>, vector<2x8x8xf32> -> vector<2x8x8xf32>
    "tpu.trace_stop"() : () -> ()
    %92 = vector.shape_cast %91 : vector<2x8x8xf32> to vector<16x8xf32>
    %c2 = arith.constant 2 : index
    %c0_45 = arith.constant 0 : index
    %c0_46 = arith.constant 0 : index
    %93 = vector.load %arg10[%c2, %c0_45, %c0_46] : memref<4x8x32xf32, #tpu.memory_space<vmem>>, vector<1x8x32xf32>
    %94 = vector.shape_cast %93 : vector<1x8x32xf32> to vector<8x32xf32>
    %cst_47 = arith.constant dense<0.000000e+00> : vector<16x32xf32>
    %95 = tpu.matmul %92, %94, %cst_47 {dimension_numbers = #tpu.dot_dimension_numbers<[1], [0], [0], [1], [0, 0, 1, 1], [], []>} : vector<16x8xf32>, vector<8x32xf32>, vector<16x32xf32> -> vector<16x32xf32>
    %96 = arith.addf %71, %95 : vector<16x32xf32>
    %97 = vector.extract_strided_slice %10 {offsets = [0, 24], sizes = [16, 8], strides = [1, 1]} : vector<16x32xf32> to vector<16x8xf32>
    %98 = vector.shape_cast %97 : vector<16x8xf32> to vector<2x8x8xf32>
    %99 = vector.extract_strided_slice %15 {offsets = [0, 24], sizes = [16, 8], strides = [1, 1]} : vector<16x32xf32> to vector<16x8xf32>
    %100 = vector.shape_cast %99 : vector<16x8xf32> to vector<2x8x8xf32>
    %101 = vector.extract_strided_slice %20 {offsets = [0, 24], sizes = [16, 8], strides = [1, 1]} : vector<16x32xf32> to vector<16x8xf32>
    %102 = vector.shape_cast %101 : vector<16x8xf32> to vector<2x8x8xf32>
    "tpu.trace_start"() <{level = 10 : i32, message = "bqd,bkd->bqk"}> : () -> ()
    %cst_48 = arith.constant dense<0.000000e+00> : vector<2x8x8xf32>
    %103 = tpu.matmul %98, %100, %cst_48 {dimension_numbers = #tpu.dot_dimension_numbers<[2], [2], [1], [1], [0, 0, 0, 1, 1, 1], [0], [0]>} : vector<2x8x8xf32>, vector<2x8x8xf32>, vector<2x8x8xf32> -> vector<2x8x8xf32>
    "tpu.trace_stop"() : () -> ()
    %cst_49 = arith.constant 0.353553385 : f32
    %104 = vector.broadcast %cst_49 : f32 to vector<2x8x8xf32>
    %105 = arith.mulf %103, %104 : vector<2x8x8xf32>
    %cst_50 = arith.constant dense<0xFF800000> : vector<2x8xf32>
    %106 = vector.multi_reduction <maximumf>, %105, %cst_50 [2] : vector<2x8x8xf32> to vector<2x8xf32>
    %107 = vector.shape_cast %106 : vector<2x8xf32> to vector<2x8x1xf32>
    %108 = vector.broadcast %107 : vector<2x8x1xf32> to vector<2x8x8xf32>
    %109 = arith.subf %105, %108 : vector<2x8x8xf32>
    %110 = math.exp %109 : vector<2x8x8xf32>
    %cst_51 = arith.constant dense<0.000000e+00> : vector<2x8xf32>
    %111 = vector.multi_reduction <add>, %110, %cst_51 [2] : vector<2x8x8xf32> to vector<2x8xf32>
    %112 = vector.shape_cast %111 : vector<2x8xf32> to vector<2x8x1xf32>
    %113 = tpu.reciprocal %112 : vector<2x8x1xf32> -> vector<2x8x1xf32>
    %114 = vector.broadcast %113 : vector<2x8x1xf32> to vector<2x8x8xf32>
    %115 = arith.mulf %110, %114 : vector<2x8x8xf32>
    "tpu.trace_start"() <{level = 10 : i32, message = "bqk,bkd->bqd"}> : () -> ()
    %cst_52 = arith.constant dense<0.000000e+00> : vector<2x8x8xf32>
    %116 = tpu.matmul %115, %102, %cst_52 {dimension_numbers = #tpu.dot_dimension_numbers<[2], [1], [1], [2], [0, 0, 0, 1, 1, 2], [0], [0]>} : vector<2x8x8xf32>, vector<2x8x8xf32>, vector<2x8x8xf32> -> vector<2x8x8xf32>
    "tpu.trace_stop"() : () -> ()
    %117 = vector.shape_cast %116 : vector<2x8x8xf32> to vector<16x8xf32>
    %c3 = arith.constant 3 : index
    %c0_53 = arith.constant 0 : index
    %c0_54 = arith.constant 0 : index
    %118 = vector.load %arg10[%c3, %c0_53, %c0_54] : memref<4x8x32xf32, #tpu.memory_space<vmem>>, vector<1x8x32xf32>
    %119 = vector.shape_cast %118 : vector<1x8x32xf32> to vector<8x32xf32>
    %cst_55 = arith.constant dense<0.000000e+00> : vector<16x32xf32>
    %120 = tpu.matmul %117, %119, %cst_55 {dimension_numbers = #tpu.dot_dimension_numbers<[1], [0], [0], [1], [0, 0, 1, 1], [], []>} : vector<16x8xf32>, vector<8x32xf32>, vector<16x32xf32> -> vector<16x32xf32>
    %121 = arith.addf %96, %120 : vector<16x32xf32>
    %122 = arith.addf %1, %121 : vector<16x32xf32>
    %c0_56 = arith.constant 0 : index
    %c0_57 = arith.constant 0 : index
    %123 = vector.load %arg11[%c0_56, %c0_57] : memref<1x32xf32, #tpu.memory_space<vmem>>, vector<1x32xf32>
    %124 = vector.broadcast %123 : vector<1x32xf32> to vector<16x32xf32>
    %125 = arith.addf %122, %124 : vector<16x32xf32>
    %cst_58 = arith.constant dense<0.000000e+00> : vector<16xf32>
    %126 = vector.multi_reduction <add>, %125, %cst_58 [1] : vector<16x32xf32> to vector<16xf32>
    %127 = vector.shape_cast %126 : vector<16xf32> to vector<16x1xf32>
    %cst_59 = arith.constant 3.200000e+01 : f32
    %128 = vector.broadcast %cst_59 : f32 to vector<16x1xf32>
    %129 = arith.divf %127, %128 : vector<16x1xf32>
    %130 = vector.broadcast %129 : vector<16x1xf32> to vector<16x32xf32>
    %131 = arith.subf %125, %130 : vector<16x32xf32>
    %132 = arith.mulf %131, %131 : vector<16x32xf32>
    %cst_60 = arith.constant dense<0.000000e+00> : vector<16xf32>
    %133 = vector.multi_reduction <add>, %132, %cst_60 [1] : vector<16x32xf32> to vector<16xf32>
    %134 = vector.shape_cast %133 : vector<16xf32> to vector<16x1xf32>
    %cst_61 = arith.constant 3.200000e+01 : f32
    %135 = vector.broadcast %cst_61 : f32 to vector<16x1xf32>
    %136 = arith.divf %134, %135 : vector<16x1xf32>
    %cst_62 = arith.constant 9.99999974E-6 : f32
    %137 = vector.broadcast %cst_62 : f32 to vector<16x1xf32>
    %138 = arith.addf %136, %137 : vector<16x1xf32>
    %139 = math.rsqrt %138 : vector<16x1xf32>
    %140 = vector.broadcast %139 : vector<16x1xf32> to vector<16x32xf32>
    %141 = arith.mulf %131, %140 : vector<16x32xf32>
    %c0_63 = arith.constant 0 : index
    %c0_64 = arith.constant 0 : index
    %142 = vector.load %arg12[%c0_63, %c0_64] : memref<1x32xf32, #tpu.memory_space<vmem>>, vector<1x32xf32>
    %143 = vector.broadcast %142 : vector<1x32xf32> to vector<16x32xf32>
    %144 = arith.mulf %141, %143 : vector<16x32xf32>
    %c0_65 = arith.constant 0 : index
    %c0_66 = arith.constant 0 : index
    %145 = vector.load %arg13[%c0_65, %c0_66] : memref<1x32xf32, #tpu.memory_space<vmem>>, vector<1x32xf32>
    %146 = vector.broadcast %145 : vector<1x32xf32> to vector<16x32xf32>
    %147 = arith.addf %144, %146 : vector<16x32xf32>
    %148 = vector.shape_cast %147 : vector<16x32xf32> to vector<2x8x32xf32>
    %c0_67 = arith.constant 0 : index
    %c0_68 = arith.constant 0 : index
    %c0_69 = arith.constant 0 : index
    %149 = vector.load %arg14[%c0_67, %c0_68, %c0_69] : memref<2x8x32xf32, #tpu.memory_space<vmem>>, vector<2x8x32xf32>
    tpu.vector_store %arg14[%c0_67, %c0_68, %c0_69], %148 {strides = array<i32>} : memref<2x8x32xf32, #tpu.memory_space<vmem>>, vector<2x8x32xf32>,
    return
  }
  func.func @transform_0(%arg0: i32) -> (i32, i32, i32) {
    %c0_i32 = arith.constant 0 : i32
    %c0_i32_0 = arith.constant 0 : i32
    %c0_i32_1 = arith.constant 0 : i32
    return %arg0, %c0_i32, %c0_i32_0 : i32, i32, i32
  }
  func.func @transform_1(%arg0: i32) -> (i32, i32, i32) {
    %c0_i32 = arith.constant 0 : i32
    %c0_i32_0 = arith.constant 0 : i32
    %c0_i32_1 = arith.constant 0 : i32
    return %arg0, %c0_i32, %c0_i32_0 : i32, i32, i32
  }
  func.func @transform_2(%arg0: i32) -> (i32, i32, i32) {
    %c0_i32 = arith.constant 0 : i32
    %c0_i32_0 = arith.constant 0 : i32
    %c0_i32_1 = arith.constant 0 : i32
    return %arg0, %c0_i32, %c0_i32_0 : i32, i32, i32
  }
  func.func @transform_3(%arg0: i32) -> (i32, i32) {
    %c0_i32 = arith.constant 0 : i32
    %c0_i32_0 = arith.constant 0 : i32
    %c0_i32_1 = arith.constant 0 : i32
    return %c0_i32, %c0_i32_0 : i32, i32
  }
  func.func @transform_4(%arg0: i32) -> (i32, i32) {
    %c0_i32 = arith.constant 0 : i32
    %c0_i32_0 = arith.constant 0 : i32
    %c0_i32_1 = arith.constant 0 : i32
    return %c0_i32, %c0_i32_0 : i32, i32
  }
  func.func @transform_5(%arg0: i32) -> (i32, i32) {
    %c0_i32 = arith.constant 0 : i32
    %c0_i32_0 = arith.constant 0 : i32
    %c0_i32_1 = arith.constant 0 : i32
    return %c0_i32, %c0_i32_0 : i32, i32
  }
  func.func @transform_6(%arg0: i32) -> (i32, i32) {
    %c0_i32 = arith.constant 0 : i32
    %c0_i32_0 = arith.constant 0 : i32
    %c0_i32_1 = arith.constant 0 : i32
    return %c0_i32, %c0_i32_0 : i32, i32
  }
  func.func @transform_7(%arg0: i32) -> (i32, i32) {
    %c0_i32 = arith.constant 0 : i32
    %c0_i32_0 = arith.constant 0 : i32
    %c0_i32_1 = arith.constant 0 : i32
    return %c0_i32, %c0_i32_0 : i32, i32
  }
  func.func @transform_8(%arg0: i32) -> (i32, i32) {
    %c0_i32 = arith.constant 0 : i32
    %c0_i32_0 = arith.constant 0 : i32
    %c0_i32_1 = arith.constant 0 : i32
    return %c0_i32, %c0_i32_0 : i32, i32
  }
  func.func @transform_9(%arg0: i32) -> (i32, i32, i32) {
    %c0_i32 = arith.constant 0 : i32
    %c0_i32_0 = arith.constant 0 : i32
    %c0_i32_1 = arith.constant 0 : i32
    %c0_i32_2 = arith.constant 0 : i32
    return %c0_i32, %c0_i32_0, %c0_i32_1 : i32, i32, i32
  }
  func.func @transform_10(%arg0: i32) -> (i32, i32) {
    %c0_i32 = arith.constant 0 : i32
    %c0_i32_0 = arith.constant 0 : i32
    %c0_i32_1 = arith.constant 0 : i32
    return %c0_i32, %c0_i32_0 : i32, i32
  }
  func.func @transform_11(%arg0: i32) -> (i32, i32) {
    %c0_i32 = arith.constant 0 : i32
    %c0_i32_0 = arith.constant 0 : i32
    %c0_i32_1 = arith.constant 0 : i32
    return %c0_i32, %c0_i32_0 : i32, i32
  }
  func.func @transform_12(%arg0: i32) -> (i32, i32) {
    %c0_i32 = arith.constant 0 : i32
    %c0_i32_0 = arith.constant 0 : i32
    %c0_i32_1 = arith.constant 0 : i32
    return %c0_i32, %c0_i32_0 : i32, i32
  }
  func.func @transform_13(%arg0: i32) -> (i32, i32, i32) {
    %c0_i32 = arith.constant 0 : i32
    %c0_i32_0 = arith.constant 0 : i32
    %c0_i32_1 = arith.constant 0 : i32
    return %arg0, %c0_i32, %c0_i32_0 : i32, i32, i32
  }
}

</mosaic_0001>

<bundles_post_ra>
// kernel: tpu_custom_call.1
= control target key start
LH: loop header
LB: loop body
LE: loop exit
PB: predicated region body
PF: predicated region fallthrough
CT: control target
= control target key end

     0   :  { %18 = vsyncpa [#allocation3], 0  ;;  %s3090_s0 = inlined_call_operand.hbm [shape: f32[2,8,32], index: 0, kind: input, shape index: {}]   ;;  %s3091_s1 = inlined_call_operand.hbm [shape: f32[2,8,32], index: 1, kind: input, shape index: {}]   ;;  %s3092_s2 = inlined_call_operand.hbm [shape: f32[2,8,32], index: 2, kind: input, shape index: {}]   ;;  %s3093_s3 = inlined_call_operand.hbm [shape: f32[32,32], index: 3, kind: input, shape index: {}]   ;;  %s3094_s4 = inlined_call_operand.vmem [shape: f32[1,32], index: 4, kind: input, shape index: {}]   ;;  %s3095_s5 = inlined_call_operand.hbm [shape: f32[32,32], index: 5, kind: input, shape index: {}]   ;;  %s3096_s6 = inlined_call_operand.vmem [shape: f32[1,32], index: 6, kind: input, shape index: {}]   ;;  %s3097_s7 = inlined_call_operand.hbm [shape: f32[32,32], index: 7, kind: input, shape index: {}]   ;;  %s3098_s8 = inlined_call_operand.hbm [shape: f32[1,32], index: 8, kind: input, shape index: {}]   ;;  %s3099_s9 = inlined_call_operand.vmem [shape: f32[4,8,32], index: 9, kind: input, shape index: {}]   ;;  %s3100_s10 = inlined_call_operand.vmem [shape: f32[1,32], index: 10, kind: input, shape index: {}]   ;;  %s3101_s11 = inlined_call_operand.vmem [shape: f32[1,32], index: 11, kind: input, shape index: {}]   ;;  %s3102_s12 = inlined_call_operand.vmem [shape: f32[1,32], index: 12, kind: input, shape index: {}]   ;;  %s3103_s13 = inlined_call_operand.hbm [shape: f32[2,8,32], index: 13, kind: output, shape index: {}]  }
   0x1   :  { %19 = vsyncpa [#allocation6], 0 }
   0x2   :  { %20 = vsyncpa [#allocation9], 0 }
   0x3   :  { %21 = vsyncpa [#allocation12], 0 }
   0x4   :  { %22 = vsyncpa [#allocation4], 0  ;;  %s2664_s25 = smov [#allocation5]   ;;  %s2665_s27 = smov [#allocation8]  }
   0x5   :  { %s40_s26 = sshll.u32 %s2664_s25, 4  ;;  %s64_s28 = sshll.u32 %s2665_s27, 4  ;;  %s41_s26 = int_to_ptr.vmem [resolvable:$true] %s40_s26  ;;  %s2749_s28 = int_to_ptr.vmem [resolvable:$true] %s64_s28 }
   0x6   :  { %s2478_s14 = scalar_lea.hbm %s3091_s1, 256 }
   0x7   :  { %p2479_p0 = scmp.ne.s32.totalorder %s3091_s1, %s2478_s14  ;;  %p2482_p1 = scmp.lt.u32.totalorder %s2478_s14, %s3091_s1 }
   0x9   :  { %p2484_p2 = pnand %p2482_p1, %p2479_p0 }
   0xb   :  { %2487 = shalt.err (!%p2484_p2)
}
   0xc   :  { %s2488_s19 = scalar_lea.vmem %s41_s26, 256  ;;  %p2493_p4 = scmp.lt.s32.totalorder %s41_s26, %s41_s26 }
   0xd   :  { %p2489_p3 = scmp.ne.s32.totalorder %s41_s26, %s2488_s19  ;;  %p2494_p5 = scmp.lt.s32.totalorder %s2488_s19, %s2488_s19 }
   0xf   :  { %p2495_p6 = por %p2494_p5, %p2493_p4 }
  0x11   :  { %p2496_p7 = pnand %p2495_p6, %p2489_p3 }
  0x13   :  { %2499 = shalt.err (!%p2496_p7)
}
  0x14   :  { %s2666_s20 = smov 128   ;;  %s2667_s21 = smov 8  }
  0x15   :  { %46 = dma.hbm_to_vmem [thread:$0]  %s3091_s1, 256, %s41_s26, [#allocation6], %s2666_s20, %s2666_s20, %s2667_s21  }
  0x16   :  { %s2500_s27 = scalar_lea.hbm %s3093_s3, 512 }
  0x17   :  { %p2501_p8 = scmp.ne.s32.totalorder %s3093_s3, %s2500_s27  ;;  %p2504_p9 = scmp.lt.u32.totalorder %s2500_s27, %s3093_s3 }
  0x19   :  { %p2506_p10 = pnand %p2504_p9, %p2501_p8 }
  0x1b   :  { %2509 = shalt.err (!%p2506_p10)
}
  0x1c   :  { %s2510_s16 = scalar_lea.vmem %s2749_s28, 512  ;;  %p2515_p12 = scmp.lt.s32.totalorder %s2749_s28, %s2749_s28 }
  0x1d   :  { %p2511_p11 = scmp.ne.s32.totalorder %s2749_s28, %s2510_s16  ;;  %p2516_p13 = scmp.lt.s32.totalorder %s2510_s16, %s2510_s16 }
  0x1f   :  { %p2517_p0 = por %p2516_p13, %p2515_p12 }
  0x21   :  { %p2518_p1 = pnand %p2517_p0, %p2511_p11 }
  0x23   :  { %2521 = shalt.err (!%p2518_p1)
}
  0x24   :  { %70 = dma.hbm_to_vmem [thread:$0]  %s3093_s3, 512, %s2749_s28, [#allocation9], %s2666_s20, %s2666_s20, %s2667_s21  }
  0x25   :  { %s2668_s17 = smov [#allocation11]   ;;  %s2669_s19 = smov [#allocation2]  }
  0x26   :  { %s92_s18 = sshll.u32 %s2668_s17, 4  ;;  %s28_s22 = sshll.u32 %s2669_s19, 4  ;;  %s93_s18 = int_to_ptr.vmem [resolvable:$true] %s92_s18  ;;  %s2786_s22 = int_to_ptr.vmem [resolvable:$true] %s28_s22 }
  0x27   :  { %s2522_s25 = scalar_lea.hbm %s3097_s7, 512 }
  0x28   :  { %p2523_p2 = scmp.ne.s32.totalorder %s3097_s7, %s2522_s25  ;;  %p2526_p3 = scmp.lt.u32.totalorder %s2522_s25, %s3097_s7 }
  0x2a   :  { %p2528_p4 = pnand %p2526_p3, %p2523_p2 }
  0x2c   :  { %2531 = shalt.err (!%p2528_p4)
}
  0x2d   :  { %s2532_s3 = scalar_lea.vmem %s93_s18, 512  ;;  %p2537_p6 = scmp.lt.s32.totalorder %s93_s18, %s93_s18 }
  0x2e   :  { %p2533_p5 = scmp.ne.s32.totalorder %s93_s18, %s2532_s3  ;;  %p2538_p7 = scmp.lt.s32.totalorder %s2532_s3, %s2532_s3 }
  0x30   :  { %p2539_p8 = por %p2538_p7, %p2537_p6 }
  0x32   :  { %p2540_p9 = pnand %p2539_p8, %p2533_p5 }
  0x34   :  { %2543 = shalt.err (!%p2540_p9)
}
  0x35   :  { %98 = dma.hbm_to_vmem [thread:$0]  %s3097_s7, 512, %s93_s18, [#allocation12], %s2666_s20, %s2666_s20, %s2667_s21  }
  0x36   :  { %s2544_s26 = scalar_lea.hbm %s3090_s0, 256 }
  0x37   :  { %p2545_p10 = scmp.ne.s32.totalorder %s3090_s0, %s2544_s26  ;;  %p2548_p11 = scmp.lt.u32.totalorder %s2544_s26, %s3090_s0 }
  0x39   :  { %p2550_p12 = pnand %p2548_p11, %p2545_p10 }
  0x3b   :  { %2553 = shalt.err (!%p2550_p12)
}
  0x3c   :  { %s2554_s25 = scalar_lea.vmem %s2786_s22, 256  ;;  %p2559_p0 = scmp.lt.s32.totalorder %s2786_s22, %s2786_s22 }
  0x3d   :  { %p2555_p13 = scmp.ne.s32.totalorder %s2786_s22, %s2554_s25  ;;  %p2560_p1 = scmp.lt.s32.totalorder %s2554_s25, %s2554_s25 }
  0x3f   :  { %p2561_p2 = por %p2560_p1, %p2559_p0 }
  0x41   :  { %p2562_p3 = pnand %p2561_p2, %p2555_p13 }
  0x43   :  { %2565 = shalt.err (!%p2562_p3)
}
  0x44   :  { %34 = dma.hbm_to_vmem [thread:$0]  %s3090_s0, 256, %s2786_s22, [#allocation3], %s2666_s20, %s2666_s20, %s2667_s21  }
  0x45   :  { %s2670_s27 = smov [#allocation7]   ;;  %s2671_s30 = smov [#allocation10]  }
  0x46   :  { %s52_s29 = sshll.u32 %s2670_s27, 4  ;;  %s78_s14 = sshll.u32 %s2671_s30, 4  ;;  %s53_s29 = int_to_ptr.vmem [resolvable:$true] %s52_s29  ;;  %s2823_s14 = int_to_ptr.vmem [resolvable:$true] %s78_s14 }
  0x47   :  { %s2566_s15 = scalar_lea.hbm %s3092_s2, 256 }
  0x48   :  { %p2567_p4 = scmp.ne.s32.totalorder %s3092_s2, %s2566_s15  ;;  %p2570_p5 = scmp.lt.u32.totalorder %s2566_s15, %s3092_s2 }
  0x4a   :  { %p2572_p6 = pnand %p2570_p5, %p2567_p4 }
  0x4c   :  { %2575 = shalt.err (!%p2572_p6)
}
  0x4d   :  { %s2576_s0 = scalar_lea.vmem %s53_s29, 256  ;;  %p2581_p8 = scmp.lt.s32.totalorder %s53_s29, %s53_s29 }
  0x4e   :  { %p2577_p7 = scmp.ne.s32.totalorder %s53_s29, %s2576_s0  ;;  %p2582_p9 = scmp.lt.s32.totalorder %s2576_s0, %s2576_s0 }
  0x50   :  { %p2583_p10 = por %p2582_p9, %p2581_p8 }
  0x52   :  { %p2584_p11 = pnand %p2583_p10, %p2577_p7 }
  0x54   :  { %2587 = shalt.err (!%p2584_p11)
}
  0x55   :  { %58 = dma.hbm_to_vmem [thread:$0]  %s3092_s2, 256, %s53_s29, [#allocation6], %s2666_s20, %s2666_s20, %s2667_s21  }
  0x56   :  { %s2588_s25 = scalar_lea.hbm %s3095_s5, 512 }
  0x57   :  { %p2589_p12 = scmp.ne.s32.totalorder %s3095_s5, %s2588_s25  ;;  %p2592_p13 = scmp.lt.u32.totalorder %s2588_s25, %s3095_s5 }
  0x59   :  { %p2594_p0 = pnand %p2592_p13, %p2589_p12 }
  0x5b   :  { %2597 = shalt.err (!%p2594_p0)
}
  0x5c   :  { %s2598_s3 = scalar_lea.vmem %s2823_s14, 512  ;;  %p2603_p2 = scmp.lt.s32.totalorder %s2823_s14, %s2823_s14 }
  0x5d   :  { %p2599_p1 = scmp.ne.s32.totalorder %s2823_s14, %s2598_s3  ;;  %p2604_p3 = scmp.lt.s32.totalorder %s2598_s3, %s2598_s3 }
  0x5f   :  { %p2605_p4 = por %p2604_p3, %p2603_p2 }
  0x61   :  { %p2606_p5 = pnand %p2605_p4, %p2599_p1 }
  0x63   :  { %2609 = shalt.err (!%p2606_p5)
}
  0x64   :  { %84 = dma.hbm_to_vmem [thread:$0]  %s3095_s5, 512, %s2823_s14, [#allocation9], %s2666_s20, %s2666_s20, %s2667_s21  }
  0x65   :  { %s2672_s28 = smov [#allocation13]   ;;  %s2610_s26 = scalar_lea.hbm %s3098_s8, 16 }
  0x66   :  { %s105_s15 = sshll.u32 %s2672_s28, 4  ;;  %p2611_p6 = scmp.ne.s32.totalorder %s3098_s8, %s2610_s26  ;;  %s106_s15 = int_to_ptr.vmem [resolvable:$true] %s105_s15 }
  0x67   :  { %p2614_p7 = scmp.lt.u32.totalorder %s2610_s26, %s3098_s8 }
  0x69   :  { %p2616_p8 = pnand %p2614_p7, %p2611_p6 }
  0x6b   :  { %2619 = shalt.err (!%p2616_p8)
}
  0x6c   :  { %s2620_s23 = scalar_lea.vmem %s106_s15, 16  ;;  %s2624_s5 = scalar_lea.vmem %s106_s15, 32 }
  0x6d   :  { %p2621_p9 = scmp.ne.s32.totalorder %s106_s15, %s2620_s23  ;;  %p2625_p10 = scmp.lt.s32.totalorder %s106_s15, %s106_s15 }
  0x6e   :  { %p2626_p11 = scmp.lt.s32.totalorder %s2624_s5, %s2620_s23 }
  0x70   :  { %p2627_p12 = por %p2626_p11, %p2625_p10 }
  0x72   :  { %p2628_p13 = pnand %p2627_p12, %p2621_p9 }
  0x74   :  { %2631 = shalt.err (!%p2628_p13)
}
  0x75   :  { %108 = dma.hbm_to_vmem [thread:$0]  %s3098_s8, 16, %s106_s15, [#allocation12]  }
  0x76   :  { %2654 = dma.done.wait [#allocation3], 256  }
  0x77   :  { %2655 = vsyncadd [#allocation3], 4294967040 }
  0x78   :  { %2656 = dma.done.wait [#allocation6], 512  }
  0x79   :  { %2657 = vsyncadd [#allocation6], 4294966784 }
  0x7a   :  { %2658 = dma.done.wait [#allocation9], 1024  }
  0x7b   :  { %2659 = vsyncadd [#allocation9], 4294966272 }
  0x7c   :  { %2660 = dma.done.wait [#allocation12], 528  }
  0x7d   :  { %2661 = vsyncadd [#allocation12], 4294966768  ;;  %v237_v0 = vld [vmem:[#allocation10] sm:$0xff]  ;;  %v238_v1 = vld [vmem:[#allocation10 + $0x8] sm:$0xff]  ;;  %vm155_vm0 = vcmask 261120   ;;  %v2673_v16 = vmov 0.0  }
  0x7e   :  { %v144_v2 = vld [vmem:[#allocation8] sm:$0xff]  ;;  %v2405_v3 = vpack.c.bf16 %v238_v1, %v237_v0  ;;  %v145_v4 = vld [vmem:[#allocation8 + $0x8] sm:$0xff]  ;;  %v239_v5 = vld [vmem:[#allocation10 + $0x10] sm:$0xff]  ;;  %vm2674_vm1 = vmmov 0   ;;  %vm421_vm2 = vcmask 64512   ;;  %s2677_s27 = smov 104  }
  0x7f   :  { %v240_v6 = vld [vmem:[#allocation10 + $0x18] sm:$0xff]  ;;  %v2397_v7 = vpack.c.bf16 %v145_v4, %v144_v2  ;;  %v146_v9 = vld [vmem:[#allocation8 + $0x10] sm:$0xff]  ;;  %v140_v11 = vld [vmem:[#allocation5] sm:$0xff]  ;;  %s2678_s19 = smov [#allocation14]  }
  0x80   :  { %v2409_v8 = vpack.c.bf16 %v240_v6, %v239_v5  ;;  %v147_v10 = vld [vmem:[#allocation8 + $0x18] sm:$0xff]  ;;  %2406 = vmatprep.subr.bf16.mxu1 %v2405_v3  ;;  %2283 = vmatprep.mubr.msk.f32.mxu1 %vm155_vm0, %v140_v11  ;;  %v2873_v13 = vld [vmem:[#allocation2] sm:$0xff]  ;;  %v141_v14 = vld [vmem:[#allocation5 + $0x8] sm:$0xff]  ;;  %s2140_s23 = sshll.u32 %s2678_s19, 4  ;;  %s2141_s23 = int_to_ptr.vmem [resolvable:$true] %s2140_s23 }
  0x81   :  { %v2401_v12 = vpack.c.bf16 %v147_v10, %v146_v9  ;;  %2408 = vmatpush3.bf16.msra.mxu1 %v2405_v3  ;;  %2398 = vmatprep.subr.bf16.mxu0 %v2397_v7  ;;  %v2877_v15 = vld [vmem:[#allocation2 + $0x8] sm:$0xff]  ;;  %v2158_v17 = vld [vmem:[%s3096_s6] ss:$0 sm:$0xff]  ;;  %v329_v27 = vld [vmem:[#allocation11] sm:$0xff]  ;;  %s2676_s6 = smov 112   ;;  %s2632_s5 = scalar_lea.vmem %s2141_s23, 256 }
  0x82   :  { %2400 = vmatpush3.bf16.msra.mxu0 %v2397_v7  ;;  %2410 = vmatprep.subr.bf16.mxu1 %v2409_v8  ;;  %v2155_v19 = vld [vmem:[%s3094_s4] ss:$0 sm:$0xff]  ;;  %v330_v28 = vld [vmem:[#allocation11 + $0x8] sm:$0xff]  ;;  %v332_v31 = vld [vmem:[#allocation11 + $0x18] sm:$0xff]  ;;  %s2675_s4 = smov 120   ;;  %p2633_p0 = scmp.ne.s32.totalorder %s2141_s23, %s2632_s5 }
  0x83   :  { %2402 = vmatprep.subr.bf16.mxu0 %v2401_v12  ;;  %2272 = vmatprep.mubr.msk.f32.mxu0 %vm155_vm0, %v2873_v13  ;;  %v331_v29 = vld [vmem:[#allocation11 + $0x10] sm:$0xff]  ;;  %v2413_v30 = vpack.c.bf16 %v330_v28, %v329_v27  ;;  %v143_v34 = vld [vmem:[#allocation7 + $0x8] sm:$0xff]  ;;  %v2161_v54 = vld [vmem:[#allocation13] ss:$0 sm:$0xff]  ;;  %p2637_p1 = scmp.lt.s32.totalorder %s2141_s23, %s2141_s23  ;;  %p2638_p2 = scmp.lt.s32.totalorder %s2632_s5, %s2632_s5 }
  0x84   :  { %v142_v32 = vld [vmem:[#allocation7] sm:$0xff]  ;;  %v2417_v33 = vpack.c.bf16 %v332_v31, %v331_v29 }
  0x85   :  { %2412 = vmatpush3.bf16.msra.mxu1 %v2409_v8  ;;  %p2639_p3 = por %p2638_p2, %p2637_p1 }
  0x86   :  { %2404 = vmatpush3.bf16.msra.mxu0 %v2401_v12  ;;  %2297 = vmatprep.subr.mxu1 %v2673_v16 }
  0x87   :  { %2414 = vmatprep.subr.bf16.mxu0 %v2413_v30  ;;  %p2640_p4 = pnand %p2639_p3, %p2633_p0 }
  0x88   :  { %2284 = vmatmul.mubr.msk.f32.vlgmr.msra.gmra.mrb[0].mxu1 %vm155_vm0, %v141_v14 }
  0x89   :  { %2273 = vmatmul.mubr.msk.f32.vlgmr.msra.gmra.mrb[0].mxu0 %vm155_vm0, %v2877_v15  ;;  %2299 = vmatprep.mubr.msk.f32.mxu1 %vm2674_vm1, %v2673_v16 }
  0x8a   :  { %2294 = vmatprep.mubr.msk.f32.mxu0 %vm155_vm0, %v142_v32  ;;  %2416 = vmatpush3.bf16.msra.mxu0 %v2413_v30 }
  0x8b   :  { %2418 = vmatprep.subr.bf16.mxu0 %v2417_v33 }
  0x8e   :  { %2420 = vmatpush3.bf16.msra.mxu0 %v2417_v33 }
  0x8f   :  { %2317 = vmatprep.subr.mxu0 %v2673_v16 }
  0x91   :  { %2295 = vmatmul.mubr.msk.f32.vlgmr.msra.gmra.mrb[2].mxu0 %vm155_vm0, %v143_v34 }
  0x92   :  { %2319 = vmatprep.mubr.msk.f32.mxu0 %vm2674_vm1, %v2673_v16 }
 0x15b   :  { %v2285_v18 = vpop.f32.mrb[0].mxu1 }
 0x15c   :  { %v320_v20 = vpop.f32.mrb[1].mxu1  ;;  %v2274_v21 = vpop.f32.mrb[0].mxu0  ;;  %v2898_v25 = vadd.f32 %v2285_v18, %v2158_v17 }
 0x15d   :  { %v2891_v22 = vadd.f32 %v2158_v17, %v320_v20  ;;  %v228_v23 = vpop.f32.mrb[1].mxu0  ;;  %v2906_v26 = vadd.f32 %v2274_v21, %v2155_v19 }
 0x15e   :  { %v2893_v24 = vadd.f32 %v2155_v19, %v228_v23 }
 0x15f   :  { %2298 = vmatpush3.xpose.msk.msra.mxu1 %vm421_vm2, %v2891_v22 }
 0x160   :  { %2302 = vmatprep.subr.mxu1 %v2673_v16 }
 0x162   :  { %2300 = vmatmul.mubr.msk.f32.vlgmr.msra.gmra.mrb[2].mxu1 %vm421_vm2, %v2893_v24 }
 0x163   :  { %2303 = vmatpush3.xpose.msk.msra.mxu1 %vm421_vm2, %v2898_v25  ;;  %2304 = vmatprep.mubr.msk.f32.mxu1 %vm2674_vm1, %v2673_v16 }
 0x164   :  { %2307 = vmatprep.subr.mxu1 %v2673_v16  ;;  %v2296_v53 = vpop.f32.mrb[2].mxu0 }
 0x165   :  { %v412_v55 = vpop.f32.mrb[3].mxu0  ;;  %v2926_v56 = vadd.f32 %v2296_v53, %v2161_v54  ;;  %v2176_v53 = vld [vmem:[%s3099_s9 + $0x8] sm:$0xff] }
 0x166   :  { %2305 = vmatmul.mubr.msk.f32.vlgmr.msra.gmra.mrb[4].mxu1 %vm421_vm2, %v2906_v26  ;;  %v2928_v57 = vadd.f32 %v2161_v54, %v412_v55  ;;  %v744_v54 = vld [vmem:[%s3099_s9] sm:$0xff] }
 0x167   :  { %2309 = vmatprep.mubr.msk.f32.mxu1 %vm2674_vm1, %v2673_v16 }
 0x168   :  { %2308 = vmatpush3.msra.mxu1 %v2928_v57 }
 0x169   :  { %2312 = vmatprep.subr.mxu1 %v2673_v16 }
 0x235   :  { %v494_v35 = vpop.f32.mrb[2].mxu1 }
 0x236   :  { %v574_v36 = vmul.f32 0.35355338, %v494_v35  ;;  %v2301_v37 = vpop.f32.mrb[3].mxu1 }
 0x238   :  { %v576_v38 = vsel %vm421_vm2, %v574_v36, -inf }
 0x239   :  { %577 = vmax.xlane.f32.xlu0 %v576_v38  ;;  %v570_v39 = vpop.f32.mrb[4].mxu1 }
 0x23a   :  { %v575_v40 = vmul.f32 0.35355338, %v570_v39  ;;  %v2306_v41 = vpop.f32.mrb[5].mxu1 }
 0x23c   :  { %v579_v42 = vsel %vm421_vm2, %v575_v40, -inf }
 0x23d   :  { %580 = vmax.xlane.f32.xlu0 %v579_v42 }
 0x253   :  { %825 = vrot.lane.b32.xlu0 %v2898_v25, %s2675_s4 }
 0x2c6   :  { %v578_v43 = vpop.xlane.xlu0 %577 }
 0x2c7   :  { %v582_v44 = vsub.f32 %v574_v36, %v578_v43 }
 0x2c9   :  { %v584_v45 = vmul.f32 1.442695, %v582_v44 }
 0x2ca   :  { %v581_v46 = vpop.xlane.xlu0 %580 }
 0x2cb   :  { %2442 = vpow2.f32 %v584_v45  ;;  %v583_v47 = vsub.f32 %v575_v40, %v581_v46 }
 0x2cd   :  { %v586_v48 = vmul.f32 1.442695, %v583_v47 }
 0x2ce   :  { %v826_v3 = vpop.permute.xlu0 %825 }
 0x2cf   :  { %2444 = vpow2.f32 %v586_v48 }
 0x2d5   :  { %v2443_v49 = vpop.eup %2442 }
 0x2d6   :  { %v588_v50 = vsel %vm421_vm2, %v2443_v49, 0.0 }
 0x2d7   :  { %589 = vadd.xlane.f32.xlu1 %v588_v50 }
 0x2d9   :  { %v2445_v51 = vpop.eup %2444 }
 0x2da   :  { %v591_v52 = vsel %vm421_vm2, %v2445_v51, 0.0 }
 0x2db   :  { %592 = vadd.xlane.f32.xlu1 %v591_v52 }
 0x2ec   :  { %823 = vrot.lane.b32.xlu1 %v2906_v26, %s2675_s4 }
 0x2f0   :  { %747 = vrot.lane.b32.xlu1 %v2891_v22, %s2675_s4 }
 0x2f4   :  { %745 = vrot.lane.b32.xlu1 %v2893_v24, %s2675_s4 }
 0x2f8   :  { %1245 = vrot.lane.b32.xlu1 %v2891_v22, %s2676_s6 }
 0x364   :  { %v590_v58 = vpop.xlane.xlu1 %589 }
 0x365   :  { %2446 = vrcp.f32 %v590_v58 }
 0x368   :  { %v593_v59 = vpop.xlane.xlu1 %592 }
 0x369   :  { %2448 = vrcp.f32 %v593_v59 }
 0x36c   :  { %v824_v60 = vpop.permute.xlu1 %823 }
 0x36f   :  { %v2447_v61 = vpop.eup %2446 }
 0x370   :  { %v596_v62 = vmul.f32 %v2447_v61, %v2443_v49  ;;  %v748_v63 = vpop.permute.xlu1 %747 }
 0x371   :  { %2318 = vmatpush3.xpose.msk.msra.mxu0 %vm421_vm2, %v748_v63 }
 0x372   :  { %2310 = vmatmul.mubr.msk.f32.vlgmr.msra.gmra.mrb[6].mxu1 %vm421_vm2, %v596_v62  ;;  %2327 = vmatprep.subr.mxu0 %v2673_v16 }
 0x373   :  { %v2449_v0 = vpop.eup %2448  ;;  %2313 = vmatpush3.msra.mxu1 %v2926_v56  ;;  %2314 = vmatprep.mubr.msk.f32.mxu1 %vm2674_vm1, %v2673_v16 }
 0x374   :  { %v597_v1 = vmul.f32 %v2449_v0, %v2445_v51  ;;  %v746_v2 = vpop.permute.xlu1 %745  ;;  %2322 = vmatprep.subr.mxu1 %v2673_v16 }
 0x375   :  { %2320 = vmatmul.mubr.msk.f32.vlgmr.msra.gmra.mrb[4].mxu0 %vm421_vm2, %v746_v2 }
 0x376   :  { %2315 = vmatmul.mubr.msk.f32.vlgmr.msra.gmra.mrb[8].mxu1 %vm421_vm2, %v597_v1  ;;  %2329 = vmatprep.mubr.msk.f32.mxu0 %vm2674_vm1, %v2673_v16 }
 0x377   :  { %2324 = vmatprep.mubr.msk.f32.mxu1 %vm2674_vm1, %v2673_v16 }
 0x378   :  { %v1246_v29 = vpop.permute.xlu1 %1245 }
 0x37a   :  { %2323 = vmatpush3.xpose.msk.msra.mxu1 %vm421_vm2, %v826_v3 }
 0x37b   :  { %2332 = vmatprep.subr.mxu1 %v2673_v16 }
 0x37d   :  { %2325 = vmatmul.mubr.msk.f32.vlgmr.msra.gmra.mrb[10].mxu1 %vm421_vm2, %v824_v60 }
 0x37e   :  { %2334 = vmatprep.mubr.msk.f32.mxu1 %vm2674_vm1, %v2673_v16 }
 0x445   :  { %v2956_v4 = vpop.f32.mrb[6].mxu1 }
 0x446   :  { %v2311_v5 = vpop.f32.mrb[7].mxu1 }
 0x448   :  { %v819_v6 = vpop.f32.mrb[4].mxu0 }
 0x449   :  { %v2958_v7 = vpop.f32.mrb[8].mxu1  ;;  %v2321_v8 = vpop.f32.mrb[5].mxu0  ;;  %v901_v27 = vmul.f32 0.35355338, %v819_v6 }
 0x44a   :  { %v2316_v9 = vpop.f32.mrb[9].mxu1  ;;  %v2187_v8 = vld [vmem:[%s3099_s9 + $0x10] sm:$0xff] }
 0x44b   :  { %v903_v28 = vsel %vm421_vm2, %v901_v27, -inf }
 0x450   :  { %v897_v10 = vpop.f32.mrb[10].mxu1 }
 0x451   :  { %v902_v11 = vmul.f32 0.35355338, %v897_v10  ;;  %v2326_v12 = vpop.f32.mrb[11].mxu1 }
 0x453   :  { %v906_v14 = vsel %vm421_vm2, %v902_v11, -inf }
 0x454   :  { %907 = vmax.xlane.f32.xlu0 %v906_v14 }
 0x46a   :  { %1003 = vrot.lane.b32.xlu0 %v2926_v56, %s2675_s4 }
 0x46e   :  { %1243 = vrot.lane.b32.xlu0 %v2893_v24, %s2676_s6 }
 0x472   :  { %1321 = vrot.lane.b32.xlu0 %v2906_v26, %s2676_s6 }
 0x4e1   :  { %v908_v17 = vpop.xlane.xlu0 %907 }
 0x4e2   :  { %v910_v18 = vsub.f32 %v902_v11, %v908_v17 }
 0x4e4   :  { %v913_v19 = vmul.f32 1.442695, %v910_v18 }
 0x4e5   :  { %v1004_v20 = vpop.permute.xlu0 %1003 }
 0x4e6   :  { %2450 = vpow2.f32 %v913_v19  ;;  %2333 = vmatpush3.msra.mxu1 %v1004_v20 }
 0x4e7   :  { %2347 = vmatprep.subr.mxu1 %v2673_v16 }
 0x4e9   :  { %v1244_v33 = vpop.permute.xlu0 %1243 }
 0x4ed   :  { %v1322_v35 = vpop.permute.xlu0 %1321 }
 0x4f0   :  { %v2451_v21 = vpop.eup %2450 }
 0x4f1   :  { %v918_v23 = vsel %vm421_vm2, %v2451_v21, 0.0 }
 0x4f2   :  { %919 = vadd.xlane.f32.xlu1 %v918_v23 }
 0x503   :  { %1323 = vrot.lane.b32.xlu1 %v2898_v25, %s2676_s6 }
 0x527   :  { %904 = vmax.xlane.f32.xlu1 %v903_v28 }
 0x57f   :  { %v920_v30 = vpop.xlane.xlu1 %919 }
 0x580   :  { %2452 = vrcp.f32 %v920_v30 }
 0x583   :  { %v1324_v34 = vpop.permute.xlu1 %1323 }
 0x58a   :  { %v2453_v31 = vpop.eup %2452 }
 0x58b   :  { %v924_v32 = vmul.f32 %v2453_v31, %v2451_v21 }
 0x58d   :  { %2335 = vmatmul.mubr.msk.f32.vlgmr.msra.gmra.mrb[12].mxu1 %vm421_vm2, %v924_v32 }
 0x58e   :  { %2348 = vmatpush3.xpose.msk.msra.mxu1 %vm421_vm2, %v1246_v29  ;;  %2349 = vmatprep.mubr.msk.f32.mxu1 %vm2674_vm1, %v2673_v16 }
 0x58f   :  { %2352 = vmatprep.subr.mxu1 %v2673_v16 }
 0x591   :  { %2350 = vmatmul.mubr.msk.f32.vlgmr.msra.gmra.mrb[14].mxu1 %vm421_vm2, %v1244_v33 }
 0x592   :  { %2353 = vmatpush3.xpose.msk.msra.mxu1 %vm421_vm2, %v1324_v34  ;;  %2354 = vmatprep.mubr.msk.f32.mxu1 %vm2674_vm1, %v2673_v16 }
 0x593   :  { %2362 = vmatprep.subr.mxu1 %v2673_v16 }
 0x595   :  { %2355 = vmatmul.mubr.msk.f32.vlgmr.msra.gmra.mrb[16].mxu1 %vm421_vm2, %v1322_v35 }
 0x596   :  { %2364 = vmatprep.mubr.msk.f32.mxu1 %vm2674_vm1, %v2673_v16 }
 0x5b4   :  { %v905_v36 = vpop.xlane.xlu1 %904 }
 0x5b5   :  { %v909_v37 = vsub.f32 %v901_v27, %v905_v36 }
 0x5b7   :  { %v911_v38 = vmul.f32 1.442695, %v909_v37 }
 0x5b9   :  { %2454 = vpow2.f32 %v911_v38 }
 0x5c3   :  { %v2455_v39 = vpop.eup %2454 }
 0x5c4   :  { %v915_v40 = vsel %vm421_vm2, %v2455_v39, 0.0 }
 0x5c5   :  { %916 = vadd.xlane.f32.xlu0 %v915_v40 }
 0x5db   :  { %926 = vrot.lane.b32.xlu0 %v2928_v57, %s2675_s4 }
 0x5df   :  { %1499 = vrot.lane.b32.xlu0 %v2926_v56, %s2676_s6 }
 0x5e3   :  { %1662 = vrot.lane.b32.xlu0 %v2891_v22, %s2677_s27 }
 0x5e7   :  { %1740 = vrot.lane.b32.xlu0 %v2898_v25, %s2677_s27 }
 0x5eb   :  { %1660 = vrot.lane.b32.xlu0 %v2893_v24, %s2677_s27 }
 0x652   :  { %v917_v41 = vpop.xlane.xlu0 %916 }
 0x653   :  { %2456 = vrcp.f32 %v917_v41 }
 0x656   :  { %v927_v42 = vpop.permute.xlu0 %926 }
 0x657   :  { %2328 = vmatpush3.msra.mxu0 %v927_v42 }
 0x658   :  { %2337 = vmatprep.subr.mxu0 %v2176_v53 }
 0x65a   :  { %v1500_v43 = vpop.permute.xlu0 %1499 }
 0x65b   :  { %2363 = vmatpush3.msra.mxu1 %v1500_v43 }
 0x65c   :  { %2372 = vmatprep.subr.mxu1 %v2673_v16 }
 0x65d   :  { %v2457_v44 = vpop.eup %2456 }
 0x65e   :  { %v923_v45 = vmul.f32 %v2457_v44, %v2455_v39  ;;  %v1663_v10 = vpop.permute.xlu0 %1662 }
 0x660   :  { %2330 = vmatmul.mubr.msk.f32.vlgmr.msra.gmra.mrb[6].mxu0 %vm421_vm2, %v923_v45  ;;  %v1075_v46 = vpop.f32.mrb[12].mxu1 }
 0x661   :  { %v2336_v22 = vpop.f32.mrb[13].mxu1  ;;  %2338 = vmatpush3.msra.mxu0 %v2176_v53  ;;  %v2199_v53 = vld [vmem:[%s3100_s10] ss:$0 sm:$0xff] }
 0x662   :  { %2342 = vmatprep.subr.mxu0 %v744_v54  ;;  %v1741_v12 = vpop.permute.xlu0 %1740 }
 0x664   :  { %v1317_v47 = vpop.f32.mrb[14].mxu1 }
 0x665   :  { %v1399_v48 = vmul.f32 0.35355338, %v1317_v47  ;;  %v2351_v25 = vpop.f32.mrb[15].mxu1 }
 0x666   :  { %v1661_v17 = vpop.permute.xlu0 %1660 }
 0x667   :  { %v1401_v49 = vsel %vm421_vm2, %v1399_v48, -inf }
 0x668   :  { %1402 = vmax.xlane.f32.xlu1 %v1401_v49  ;;  %v1395_v24 = vpop.f32.mrb[16].mxu1  ;;  %v2196_v49 = vld [vmem:[%s3099_s9 + $0x18] sm:$0xff] }
 0x669   :  { %v1400_v50 = vmul.f32 0.35355338, %v1395_v24  ;;  %v2356_v51 = vpop.f32.mrb[17].mxu1 }
 0x66b   :  { %v1404_v52 = vsel %vm421_vm2, %v1400_v50, -inf }
 0x66c   :  { %1405 = vmax.xlane.f32.xlu1 %v1404_v52 }
 0x6f5   :  { %v1403_v55 = vpop.xlane.xlu1 %1402 }
 0x6f6   :  { %v1407_v58 = vsub.f32 %v1399_v48, %v1403_v55 }
 0x6f8   :  { %v1409_v59 = vmul.f32 1.442695, %v1407_v58 }
 0x6f9   :  { %v1406_v60 = vpop.xlane.xlu1 %1405 }
 0x6fa   :  { %2458 = vpow2.f32 %v1409_v59  ;;  %v1408_v61 = vsub.f32 %v1400_v50, %v1406_v60 }
 0x6fc   :  { %v1411_v62 = vmul.f32 1.442695, %v1408_v61 }
 0x6fe   :  { %2460 = vpow2.f32 %v1411_v62 }
 0x704   :  { %v2459_v63 = vpop.eup %2458 }
 0x705   :  { %v1413_v0 = vsel %vm421_vm2, %v2459_v63, 0.0 }
 0x706   :  { %1414 = vadd.xlane.f32.xlu1 %v1413_v0 }
 0x708   :  { %v2461_v1 = vpop.eup %2460 }
 0x709   :  { %v1416_v2 = vsel %vm421_vm2, %v2461_v1, 0.0 }
 0x70a   :  { %1417 = vadd.xlane.f32.xlu1 %v1416_v2 }
 0x71b   :  { %1423 = vrot.lane.b32.xlu1 %v2928_v57, %s2676_s6 }
 0x71f   :  { %1738 = vrot.lane.b32.xlu1 %v2906_v26, %s2677_s27 }
 0x733   :  { %v998_v3 = vpop.f32.mrb[6].mxu0 }
 0x734   :  { %v2331_v5 = vpop.f32.mrb[7].mxu0  ;;  %2339 = vmatprep.mubr.msk.f32.mxu0 %vm421_vm2, %v998_v3 }
 0x735   :  { %2340 = vmatmul.mubr.msk.f32.vlgmr.msra.gmra.mrb[8].mxu0 %vm421_vm2, %v1075_v46 }
 0x736   :  { %2344 = vmatprep.mubr.msk.f32.mxu0 %vm421_vm2, %v2956_v4  ;;  %2343 = vmatpush3.msra.mxu0 %v744_v54 }
 0x737   :  { %2357 = vmatprep.subr.mxu0 %v2673_v16 }
 0x73d   :  { %2345 = vmatmul.mubr.msk.f32.vlgmr.msra.gmra.mrb[8].mxu0 %vm421_vm2, %v2958_v7 }
 0x73e   :  { %2359 = vmatprep.mubr.msk.f32.mxu0 %vm2674_vm1, %v2673_v16 }
 0x793   :  { %v1415_v6 = vpop.xlane.xlu1 %1414 }
 0x794   :  { %2462 = vrcp.f32 %v1415_v6 }
 0x797   :  { %v1418_v26 = vpop.xlane.xlu1 %1417 }
 0x798   :  { %2464 = vrcp.f32 %v1418_v26 }
 0x79b   :  { %v1424_v9 = vpop.permute.xlu1 %1423 }
 0x79c   :  { %2358 = vmatpush3.msra.mxu0 %v1424_v9 }
 0x79d   :  { %2367 = vmatprep.subr.mxu0 %v2187_v8 }
 0x79e   :  { %v2463_v4 = vpop.eup %2462 }
 0x79f   :  { %v1421_v11 = vmul.f32 %v2463_v4, %v2459_v63  ;;  %v1739_v23 = vpop.permute.xlu1 %1738 }
 0x7a1   :  { %2360 = vmatmul.mubr.msk.f32.vlgmr.msra.gmra.mrb[10].mxu0 %vm421_vm2, %v1421_v11 }
 0x7a2   :  { %v2465_v7 = vpop.eup %2464  ;;  %2368 = vmatpush3.msra.mxu0 %v2187_v8 }
 0x7a3   :  { %v1422_v14 = vmul.f32 %v2465_v7, %v2461_v1  ;;  %2377 = vmatprep.subr.mxu0 %v2673_v16 }
 0x7a5   :  { %2365 = vmatmul.mubr.msk.f32.vlgmr.msra.gmra.mrb[18].mxu1 %vm421_vm2, %v1422_v14  ;;  %v2200_v14 = vld [vmem:[%s3101_s11] ss:$0 sm:$0xff] }
 0x7a6   :  { %2373 = vmatpush3.xpose.msk.msra.mxu1 %vm421_vm2, %v1663_v10  ;;  %2374 = vmatprep.mubr.msk.f32.mxu1 %vm2674_vm1, %v2673_v16 }
 0x7a7   :  { %2382 = vmatprep.subr.mxu1 %v2673_v16 }
 0x7a9   :  { %2375 = vmatmul.mubr.msk.f32.vlgmr.msra.gmra.mrb[20].mxu1 %vm421_vm2, %v1661_v17 }
 0x7aa   :  { %2384 = vmatprep.mubr.msk.f32.mxu1 %vm2674_vm1, %v2673_v16 }
 0x874   :  { %v1495_v18 = vpop.f32.mrb[10].mxu0 }
 0x875   :  { %v2361_v19 = vpop.f32.mrb[11].mxu0  ;;  %2369 = vmatprep.mubr.msk.f32.mxu0 %vm421_vm2, %v1495_v18 }
 0x878   :  { %v1571_v20 = vpop.f32.mrb[18].mxu1 }
 0x879   :  { %v2366_v21 = vpop.f32.mrb[19].mxu1  ;;  %2370 = vmatmul.mubr.msk.f32.vlgmr.msra.gmra.mrb[8].mxu0 %vm421_vm2, %v1571_v20  ;;  %v2201_v20 = vld [vmem:[%s3102_s12] ss:$0 sm:$0xff] }
 0x87a   :  { %2378 = vmatpush3.xpose.msk.msra.mxu0 %vm421_vm2, %v1741_v12  ;;  %2379 = vmatprep.mubr.msk.f32.mxu0 %vm2674_vm1, %v2673_v16 }
 0x87b   :  { %2387 = vmatprep.subr.mxu0 %v2673_v16 }
 0x87c   :  { %v1734_v27 = vpop.f32.mrb[20].mxu1 }
 0x87d   :  { %v1816_v28 = vmul.f32 0.35355338, %v1734_v27  ;;  %v2376_v29 = vpop.f32.mrb[21].mxu1  ;;  %2380 = vmatmul.mubr.msk.f32.vlgmr.msra.gmra.mrb[12].mxu0 %vm421_vm2, %v1739_v23 }
 0x87e   :  { %2389 = vmatprep.mubr.msk.f32.mxu0 %vm2674_vm1, %v2673_v16 }
 0x87f   :  { %v1818_v30 = vsel %vm421_vm2, %v1816_v28, -inf }
 0x880   :  { %1819 = vmax.xlane.f32.xlu0 %v1818_v30 }
 0x90d   :  { %v1820_v31 = vpop.xlane.xlu0 %1819 }
 0x90e   :  { %v1824_v32 = vsub.f32 %v1816_v28, %v1820_v31 }
 0x910   :  { %v1826_v33 = vmul.f32 1.442695, %v1824_v32 }
 0x912   :  { %2466 = vpow2.f32 %v1826_v33 }
 0x91c   :  { %v2467_v34 = vpop.eup %2466 }
 0x91d   :  { %v1830_v35 = vsel %vm421_vm2, %v2467_v34, 0.0 }
 0x91e   :  { %1831 = vadd.xlane.f32.xlu0 %v1830_v35 }
 0x950   :  { %v1812_v36 = vpop.f32.mrb[12].mxu0 }
 0x951   :  { %v1817_v37 = vmul.f32 0.35355338, %v1812_v36  ;;  %v2381_v38 = vpop.f32.mrb[13].mxu0 }
 0x953   :  { %v1821_v39 = vsel %vm421_vm2, %v1817_v37, -inf }
 0x954   :  { %1822 = vmax.xlane.f32.xlu1 %v1821_v39 }
 0x965   :  { %1916 = vrot.lane.b32.xlu1 %v2926_v56, %s2677_s27 }
 0x9ab   :  { %v1832_v45 = vpop.xlane.xlu0 %1831 }
 0x9e1   :  { %v1823_v16 = vpop.xlane.xlu1 %1822 }
 0x9e2   :  { %v1825_v40 = vsub.f32 %v1817_v37, %v1823_v16 }
 0x9e4   :  { %v1828_v41 = vmul.f32 1.442695, %v1825_v40 }
 0x9e5   :  { %v1917_v42 = vpop.permute.xlu1 %1916 }
 0x9e6   :  { %2468 = vpow2.f32 %v1828_v41  ;;  %2388 = vmatpush3.msra.mxu0 %v1917_v42 }
 0x9e7   :  { %2470 = vrcp.f32 %v1832_v45  ;;  %2392 = vmatprep.subr.mxu0 %v2196_v49 }
 0x9f0   :  { %v2469_v43 = vpop.eup %2468 }
 0x9f1   :  { %v1833_v44 = vsel %vm421_vm2, %v2469_v43, 0.0  ;;  %v2471_v22 = vpop.eup %2470 }
 0x9f2   :  { %1834 = vadd.xlane.f32.xlu0 %v1833_v44  ;;  %v1838_v47 = vmul.f32 %v2471_v22, %v2467_v34 }
 0xa08   :  { %1840 = vrot.lane.b32.xlu0 %v2928_v57, %s2677_s27 }
 0xa7f   :  { %v1835_v46 = vpop.xlane.xlu0 %1834 }
 0xa80   :  { %2472 = vrcp.f32 %v1835_v46 }
 0xa83   :  { %v1841_v56 = vpop.permute.xlu0 %1840 }
 0xa84   :  { %2383 = vmatpush3.msra.mxu1 %v1841_v56 }
 0xa85   :  { %2385 = vmatmul.mubr.msk.f32.vlgmr.msra.gmra.mrb[22].mxu1 %vm421_vm2, %v1838_v47 }
 0xa8a   :  { %v2473_v48 = vpop.eup %2472 }
 0xa8b   :  { %v1839_v25 = vmul.f32 %v2473_v48, %v2469_v43 }
 0xa8d   :  { %2390 = vmatmul.mubr.msk.f32.vlgmr.msra.gmra.mrb[14].mxu0 %vm421_vm2, %v1839_v25 }
 0xa8e   :  { %2393 = vmatpush3.msra.mxu0 %v2196_v49 }
 0xb58   :  { %v1912_v57 = vpop.f32.mrb[22].mxu1 }
 0xb59   :  { %v2386_v24 = vpop.f32.mrb[23].mxu1  ;;  %2394 = vmatprep.mubr.msk.f32.mxu0 %vm421_vm2, %v1912_v57 }
 0xb60   :  { %v1988_v50 = vpop.f32.mrb[14].mxu0 }
 0xb61   :  { %v2391_v51 = vpop.f32.mrb[15].mxu0  ;;  %2395 = vmatmul.mubr.msk.f32.vlgmr.msra.gmra.mrb[8].mxu0 %vm421_vm2, %v1988_v50 }
 0xc34   :  { %v2396_v52 = vpop.f32.mrb[8].mxu0 }
 0xc35   :  { %v2078_v54 = vadd.f32 %v2396_v52, %v2877_v15  ;;  %v2066_v55 = vpop.f32.mrb[9].mxu0 }
 0xc36   :  { %v2077_v58 = vadd.f32 %v2066_v55, %v2873_v13 }
 0xc37   :  { %v2087_v59 = vadd.f32 %v2199_v53, %v2078_v54 }
 0xc38   :  { %v2086_v60 = vadd.f32 %v2199_v53, %v2077_v58 }
 0xc39   :  { %v2091_v61 = vsel %vm155_vm0, %v2087_v59, 0.0 }
 0xc3a   :  { %2092 = vadd.xlane.f32.xlu0 %v2091_v61  ;;  %v2088_v62 = vsel %vm155_vm0, %v2086_v60, 0.0 }
 0xc3b   :  { %2089 = vadd.xlane.f32.xlu1 %v2088_v62 }
 0xcc7   :  { %v2093_v63 = vpop.xlane.xlu0 %2092 }
 0xcc8   :  { %v2096_v0 = vmul.f32 0.03125, %v2093_v63  ;;  %v2090_v1 = vpop.xlane.xlu1 %2089 }
 0xcc9   :  { %v2095_v2 = vmul.f32 0.03125, %v2090_v1 }
 0xcca   :  { %v2098_v3 = vsub.f32 %v2087_v59, %v2096_v0 }
 0xccb   :  { %v2097_v5 = vsub.f32 %v2086_v60, %v2095_v2 }
 0xccc   :  { %v2100_v6 = vmul.f32 %v2098_v3, %v2098_v3 }
 0xccd   :  { %v2099_v26 = vmul.f32 %v2097_v5, %v2097_v5 }
 0xcce   :  { %v2104_v15 = vsel %vm155_vm0, %v2100_v6, 0.0 }
 0xccf   :  { %2105 = vadd.xlane.f32.xlu1 %v2104_v15  ;;  %v2101_v13 = vsel %vm155_vm0, %v2099_v26, 0.0 }
 0xcd0   :  { %2102 = vadd.xlane.f32.xlu0 %v2101_v13 }
 0xd5c   :  { %v2106_v8 = vpop.xlane.xlu1 %2105 }
 0xd5d   :  { %v2108_v9 = vmul.f32 0.03125, %v2106_v8  ;;  %v2103_v10 = vpop.xlane.xlu0 %2102 }
 0xd5e   :  { %v2107_v4 = vmul.f32 0.03125, %v2103_v10 }
 0xd5f   :  { %v2110_v11 = vadd.f32 1e-05, %v2108_v9 }
 0xd60   :  { %v2109_v7 = vadd.f32 1e-05, %v2107_v4 }
 0xd61   :  { %2474 = vrsqrt.f32 %v2110_v11 }
 0xd62   :  { %2476 = vrsqrt.f32 %v2109_v7 }
 0xd6b   :  { %v2475_v12 = vpop.eup %2474 }
 0xd6c   :  { %v2477_v17 = vpop.eup %2476  ;;  %v2114_v18 = vmul.f32 %v2475_v12, %v2098_v3 }
 0xd6d   :  { %v2113_v19 = vmul.f32 %v2477_v17, %v2097_v5 }
 0xd6e   :  { %v2123_v21 = vmul.f32 %v2200_v14, %v2114_v18 }
 0xd6f   :  { %v2122_v23 = vmul.f32 %v2200_v14, %v2113_v19 }
 0xd70   :  { %v2132_v27 = vadd.f32 %v2201_v20, %v2123_v21 }
 0xd71   :  { %v2131_v28 = vadd.f32 %v2201_v20, %v2122_v23 }
 0xd72   :  { %2134 = vst.msk [vmem:[#allocation14 + $0x8] sm:$0xff] %vm155_vm0, %v2132_v27 }
 0xd73   :  { %2133 = vst.msk [vmem:[#allocation14] sm:$0xff] %vm155_vm0, %v2131_v28 }
 0xd74   :  { %2643 = shalt.err (!%p2640_p4)
}
 0xd75   :  { %s2644_s14 = scalar_lea.hbm %s3103_s13, 256 }
 0xd76   :  { %p2645_p5 = scmp.ne.s32.totalorder %s3103_s13, %s2644_s14  ;;  %p2648_p6 = scmp.lt.u32.totalorder %s2644_s14, %s3103_s13 }
 0xd78   :  { %p2650_p7 = pnand %p2648_p6, %p2645_p5 }
 0xd7a   :  { %2653 = shalt.err (!%p2650_p7)
}
 0xd7b   :  { %2146 = dma.vmem_to_hbm [thread:$0]  %s2141_s23, 256, %s3103_s13, [#allocation4], %s2666_s20, %s2666_s20, %s2667_s21  }
 0xd7c   :  { %2662 = dma.done.wait [#allocation4], 256  }
 0xd7d   :  { %2663 = vsyncadd [#allocation4], 4294967040 }
 0xd7e   :  { %2150 = vsyncpa [#allocation3], 1 }
 0xd7f   :  { %2151 = vsyncpa [#allocation6], 1 }
 0xd80   :  { %2152 = vsyncpa [#allocation9], 1 }
 0xd81   :  { %2153 = vsyncpa [#allocation12], 1 }
 0xd82   :  { %2154 = vsyncpa [#allocation4], 1 }

</bundles_post_ra>
